<compile_context>
chip_gen: v7x
topology: tpu7x:2x2x1
jax: 0.10.0
libtpu: 0.0.40
codegen_flags: <defaults>
</compile_context>

<pallas_src>
import functools

import numpy as np
import jax
import jax.numpy as jnp
from jax.experimental import pallas as pl
from jax.experimental.pallas import tpu as pltpu


# --------------------------------------------------------------------------- #
# The fused forward kernel                                                      #
# --------------------------------------------------------------------------- #
def _make_fused_kernel(nq, sep_ch, DD, conv_num, n_fc, mode):
    half = sep_ch * 4            # width of the Re (or Im) block of one qubit's head
    chunk = 2 * half             # total width of one qubit's head output
    inv_ch = 1.0 / float(sep_ch)
    two_dd = 2 * DD

    def kernel(*refs):
        i = 0
        x_ref = refs[i]; i += 1                                   # (bt, 2*DD)
        wsep_ref, bsep_ref = refs[i], refs[i + 1]; i += 2         # fused separator head
        g_ref, r_ref = refs[i], refs[i + 1]; i += 2               # rho expansion / reduction
        conv_refs = refs[i:i + 2 * conv_num]; i += 2 * conv_num   # lowered conv GEMMs
        fc_refs = refs[i:i + 2 * n_fc]; i += 2 * n_fc             # FC stack
        o_ref = refs[i]

        f32 = jnp.float32
        xflat = x_ref[...]                                        # (bt, 2*DD)

        # (1) all separator heads in one lane-dense GEMM
        sep = jnp.dot(xflat, wsep_ref[...], preferred_element_type=f32) + bsep_ref[...]

        # (2) rho reconstruction, fully in VMEM: per-qubit kron (bit) expansion as a
        #     matmul with constant G[q], complex product over qubits, channel mean via R.
        pr = pi = None
        for q in range(nq):
            base = q * chunk
            mr = sep[:, base:base + half]                         # (bt, sep_ch*4)  Re
            mi = sep[:, base + half:base + chunk]                 # (bt, sep_ch*4)  Im
            gq = g_ref[q]                                         # (sep_ch*4, sep_ch*DD)
            er = jnp.dot(mr, gq, preferred_element_type=f32)      # (bt, sep_ch*DD)
            ei = jnp.dot(mi, gq, preferred_element_type=f32)
            if q == 0:
                pr, pi = er, ei
            else:
                pr, pi = pr * er - pi * ei, pr * ei + pi * er
        rmat = r_ref[...]
        rho_r = jnp.dot(pr, rmat, preferred_element_type=f32) * inv_ch   # (bt, DD)
        rho_i = jnp.dot(pi, rmat, preferred_element_type=f32) * inv_ch   # (bt, DD)

        # (3) torch.cat((x, rho), dim=1) + conv #0: the concat never materializes - the
        #     lowered conv-0 weight is split into three row blocks and accumulated.
        w0 = conv_refs[0][...]
        b0 = conv_refs[1][...]
        h = (jnp.dot(xflat, w0[:two_dd, :], preferred_element_type=f32)
             + jnp.dot(rho_r, w0[two_dd:two_dd + DD, :], preferred_element_type=f32)
             + jnp.dot(rho_i, w0[two_dd + DD:, :], preferred_element_type=f32)
             + b0)
        h = jnp.maximum(h, 0.0)

        # (4) remaining convs as lowered GEMMs (im2col folded into the weights)
        for l in range(1, conv_num):
            w = conv_refs[2 * l][...]
            b = conv_refs[2 * l + 1][...]
            h = jnp.maximum(jnp.dot(h, w, preferred_element_type=f32) + b, 0.0)

        # (5) FC stack, VMEM resident; only the final (bt, output_size) goes to HBM
        for l in range(n_fc):
            w = fc_refs[2 * l][...]
            b = fc_refs[2 * l + 1][...]
            h = jnp.dot(h, w, preferred_element_type=f32) + b
            if l < n_fc - 1:
                h = jnp.maximum(h, 0.0)
            elif mode == "classifier":
                h = jax.nn.sigmoid(h)

        o_ref[...] = h.astype(o_ref.dtype)

    return kernel


def fused_forward(fused, x, *, mode, batch_block=512):
    """Run the whole CombinedClassifier forward in a single pallas_call."""
    B = x.shape[0]
    wsep, bsep = fused["wsep"], fused["bsep"]
    gs, rmat = fused["G"], fused["R"]
    convs = fused["convs"]
    fcs = fused["fcs"]

    nq = gs.shape[0]
    sep_ch = gs.shape[1] // 4
    DD = gs.shape[2] // sep_ch
    conv_num = len(convs)
    n_fc = len(fcs)
    out_dim = fcs[-1][0].shape[1]
    assert conv_num >= 1

    xflat = x.reshape(B, -1)
    assert xflat.shape[1] == 2 * DD

    kernel = _make_fused_kernel(nq, sep_ch, DD, conv_num, n_fc, mode)

    flat_weights = [wsep, bsep, gs, rmat]
    for w, b in convs:
        flat_weights += [w, b]
    for w, b in fcs:
        flat_weights += [w, b]

    out_shape = jax.ShapeDtypeStruct((B, out_dim), jnp.float32)

    if B <= batch_block or B % batch_block != 0:
        # Whole problem in a single VMEM-resident invocation: no grid, no pipelining
        # machinery / double buffering (review item: drop grid=(1,) full-block specs).
        vmem = pl.BlockSpec(memory_space=pltpu.MemorySpace.VMEM)
        return pl.pallas_call(
            kernel,
            out_shape=out_shape,
            in_specs=[vmem] * (1 + len(flat_weights)),
            out_specs=vmem,
        )(xflat, *flat_weights)

    # Large-batch path: tile rows over a 1-D "parallel" grid (sharded across the two
    # TensorCores on v7x); weights are replicated (block index 0 every step).
    def rep_spec(a):
        nd = a.ndim
        return pl.BlockSpec(a.shape, lambda i: (0,) * nd)

    in_specs = [pl.BlockSpec((batch_block, xflat.shape[1]), lambda i: (i, 0))]
    in_specs += [rep_spec(a) for a in flat_weights]
    out_specs = pl.BlockSpec((batch_block, out_dim), lambda i: (i, 0))
    return pl.pallas_call(
        kernel,
        out_shape=out_shape,
        grid=(B // batch_block,),
        in_specs=in_specs,
        out_specs=out_specs,
        compiler_params=pltpu.CompilerParams(dimension_semantics=("parallel",)),
    )(xflat, *flat_weights)


# --------------------------------------------------------------------------- #
# Parameter construction (deterministic, synthetic) - unchanged semantics       #
# --------------------------------------------------------------------------- #
def init_params(key, *, qbits_num, output_size, conv_num, fc_num, kernel_size,
                filters_ratio, fc_units, sep_ch, stride, dilation, cnn_in_ch=4):
    D = 2 ** qbits_num
    params = {"sep": [], "cnn_convs": [], "cnn_fcs": []}

    # FancySeparator: one head per qubit, (B, 2*D*D) -> (B, 2*sep_ch*2*2)
    for _ in range(qbits_num):
        key, k1, k2 = jax.random.split(key, 3)
        w = jax.random.normal(k1, (2 * D * D, 2 * sep_ch * 4), jnp.float32) * 0.2
        b = jax.random.normal(k2, (2 * sep_ch * 4,), jnp.float32) * 0.05
        params["sep"].append((w, b))

    # CNN conv stack (PyTorch OIHW weights)
    ch = cnn_in_ch
    d = D
    for _ in range(conv_num):
        out_ch = int(ch * filters_ratio)
        key, k1, k2 = jax.random.split(key, 3)
        w = jax.random.normal(k1, (out_ch, ch, kernel_size, kernel_size), jnp.float32) * 0.2
        b = jax.random.normal(k2, (out_ch,), jnp.float32) * 0.05
        params["cnn_convs"].append((w, b))
        ch = out_ch
        d = (d - dilation * (kernel_size - 1) - 1) // stride + 1

    # CNN fully-connected stack (fc_trans='const')
    feat = ch * d * d
    dims = [feat] + [fc_units] * fc_num + [output_size]
    for l in range(len(dims) - 1):
        key, k1, k2 = jax.random.split(key, 3)
        w = jax.random.normal(k1, (dims[l], dims[l + 1]), jnp.float32) / jnp.sqrt(float(dims[l]))
        b = jax.random.normal(k2, (dims[l + 1],), jnp.float32) * 0.05
        params["cnn_fcs"].append((w, b))
    return params


# --------------------------------------------------------------------------- #
# One-time weight preprocessing ("glue"): fuse / lower everything for the kernel #
# --------------------------------------------------------------------------- #
def _conv_output_hw(h, w, k, stride, dilation):
    ho = (h - dilation * (k - 1) - 1) // stride + 1
    wo = (w - dilation * (k - 1) - 1) // stride + 1
    return ho, wo


def _lower_conv_to_matmul(w, b, H, W, stride, dilation):
    """Fold im2col + weight reshape into one dense (Cin*H*W, Cout*Ho*Wo) matrix."""
    wnp = np.asarray(w)
    bnp = np.asarray(b)
    Cout, Cin, k, _ = wnp.shape
    Ho, Wo = _conv_output_hw(H, W, k, stride, dilation)
    L = np.zeros((Cin * H * W, Cout * Ho * Wo), np.float32)
    for co in range(Cout):
        for ci in range(Cin):
            for oy in range(Ho):
                for ox in range(Wo):
                    col = co * Ho * Wo + oy * Wo + ox
                    for dy in range(k):
                        for dx in range(k):
                            y = oy * stride + dy * dilation
                            xx = ox * stride + dx * dilation
                            L[ci * H * W + y * W + xx, col] = wnp[co, ci, dy, dx]
    b_exp = np.repeat(bnp, Ho * Wo).astype(np.float32).reshape(1, -1)
    return jnp.asarray(L), jnp.asarray(b_exp), Ho, Wo


def _build_rho_expansion(qbits_num, sep_ch):
    """Constant matrices for the in-kernel rho reconstruction.

    G[q] (sep_ch*4, sep_ch*DD): expands each channel's 2x2 factor to its DxD kron factor
      (column c*DD + i*D + j picks element (bit_q(i), bit_q(j)) of channel c).
    R (sep_ch*DD, DD): sums over the sep_ch channels.
    """
    D = 2 ** qbits_num
    DD = D * D
    G = np.zeros((qbits_num, sep_ch * 4, sep_ch * DD), np.float32)
    idx = np.arange(D)
    for q in range(qbits_num):
        bit = (idx >> (qbits_num - 1 - q)) & 1
        e = bit[:, None] * 2 + bit[None, :]          # (D, D): 2x2 element id per (i, j)
        for c in range(sep_ch):
            for i in range(D):
                for j in range(D):
                    G[q, c * 4 + e[i, j], c * DD + i * D + j] = 1.0
    R = np.zeros((sep_ch * DD, DD), np.float32)
    for c in range(sep_ch):
        R[c * DD:(c + 1) * DD, :] = np.eye(DD, dtype=np.float32)
    return jnp.asarray(G), jnp.asarray(R)


def prepare_fused_params(params, *, qbits_num, sep_ch, stride, dilation):
    D = 2 ** qbits_num
    # (a) all per-qubit separator heads fused into one lane-dense GEMM
    wsep = jnp.concatenate([w for (w, _) in params["sep"]], axis=1)
    bsep = jnp.concatenate([b for (_, b) in params["sep"]], axis=0).reshape(1, -1)
    # (b) constant matrices for the in-kernel rho reconstruction
    G, R = _build_rho_expansion(qbits_num, sep_ch)
    # (c) convolutions lowered to dense GEMMs (im2col folded into the weights)
    convs = []
    h = w = D
    for (cw, cb) in params["cnn_convs"]:
        L, b_exp, h, w = _lower_conv_to_matmul(cw, cb, h, w, stride, dilation)
        convs.append((L, b_exp))
    # (d) FC weights with row-vector biases
    fcs = [(fw, fb.reshape(1, -1)) for (fw, fb) in params["cnn_fcs"]]
    return {"wsep": wsep, "bsep": bsep, "G": G, "R": R, "convs": convs, "fcs": fcs}


# --------------------------------------------------------------------------- #
# Pure-JAX reference (un-fused) forward, used only to validate the kernel       #
# --------------------------------------------------------------------------- #
def reference_forward(params, x, *, qbits_num, sep_ch, stride, dilation, mode):
    hp = jax.lax.Precision.HIGHEST
    B = x.shape[0]
    D = 2 ** qbits_num
    xf = x.reshape(B, -1)

    seps = []
    for q in range(qbits_num):
        w, b = params["sep"][q]
        o = jnp.dot(xf, w, precision=hp) + b
        seps.append(o.reshape(B, 2 * sep_ch, 2, 2))

    fr_list, fi_list = [], []
    for q, m in enumerate(seps):
        dr = m[:, :sep_ch]
        di = m[:, sep_ch:]
        bit = (jnp.arange(D) >> (qbits_num - 1 - q)) & 1
        fr_list.append(dr[:, :, bit][:, :, :, bit])
        fi_list.append(di[:, :, bit][:, :, :, bit])
    pr, pi = fr_list[0], fi_list[0]
    for q in range(1, qbits_num):
        ar, ai = fr_list[q], fi_list[q]
        pr, pi = pr * ar - pi * ai, pr * ai + pi * ar
    rho = jnp.stack([pr.sum(axis=1), pi.sum(axis=1)], axis=1) / sep_ch

    h = jnp.concatenate([x, rho], axis=1)
    for (w, b) in params["cnn_convs"]:
        h = jax.lax.conv_general_dilated(
            h, w, window_strides=(stride, stride), padding="VALID",
            rhs_dilation=(dilation, dilation),
            dimension_numbers=("NCHW", "OIHW", "NCHW"), precision=hp)
        h = jnp.maximum(h + b[None, :, None, None], 0.0)
    h = h.reshape(B, -1)
    n_fc = len(params["cnn_fcs"])
    for i, (w, b) in enumerate(params["cnn_fcs"]):
        h = jnp.dot(h, w, precision=hp) + b
        if i < n_fc - 1:
            h = jnp.maximum(h, 0.0)
        elif mode == "classifier":
            h = jax.nn.sigmoid(h)
    return h


# --------------------------------------------------------------------------- #
# Demo                                                                          #
# --------------------------------------------------------------------------- #
if __name__ == "__main__":
    # hyper-parameters (small, consistent with the module's constructor)
    qbits_num = 2          # -> D = 4
    output_size = 1
    conv_num = 2
    fc_num = 2
    kernel_size = 2
    filters_ratio = 2.0
    sep_ch = 8
    fc_units = 32
    stride = 1
    dilation = 1
    mode = "regression"

    B = 2
    D = 2 ** qbits_num

    key = jax.random.PRNGKey(0)
    key, kx, kp = jax.random.split(key, 3)
    # layout: NCHW (B, 2, D, D); ch0 = Re(rho_in), ch1 = Im(rho_in)
    x = jax.random.normal(kx, (B, 2, D, D), jnp.float32)

    params = init_params(
        kp,
        qbits_num=qbits_num, output_size=output_size, conv_num=conv_num,
        fc_num=fc_num, kernel_size=kernel_size, filters_ratio=filters_ratio,
        fc_units=fc_units, sep_ch=sep_ch, stride=stride, dilation=dilation,
        cnn_in_ch=4,  # x (2 ch) + reconstructed rho (2 ch)
    )
    fused = prepare_fused_params(params, qbits_num=qbits_num, sep_ch=sep_ch,
                                 stride=stride, dilation=dilation)

    fwd = jax.jit(functools.partial(fused_forward, mode=mode))
    out = jax.block_until_ready(fwd(fused, x))
    assert out.shape == (B, output_size), out.shape

    ref = jax.block_until_ready(
        reference_forward(params, x, qbits_num=qbits_num, sep_ch=sep_ch,
                          stride=stride, dilation=dilation, mode=mode))
    np.testing.assert_allclose(np.asarray(out), np.asarray(ref), rtol=5e-3, atol=5e-3)
    print("KERNEL_OK")
</pallas_src>

<mosaic_0001>
module attributes {stable_mosaic.version = 11 : i64} {
  func.func @kernel(%arg0: memref<2x32xf32, #tpu.memory_space<vmem>>, %arg1: memref<32x128xf32, #tpu.memory_space<vmem>>, %arg2: memref<1x128xf32, #tpu.memory_space<vmem>>, %arg3: memref<2x32x128xf32, #tpu.memory_space<vmem>>, %arg4: memref<128x16xf32, #tpu.memory_space<vmem>>, %arg5: memref<64x72xf32, #tpu.memory_space<vmem>>, %arg6: memref<1x72xf32, #tpu.memory_space<vmem>>, %arg7: memref<72x64xf32, #tpu.memory_space<vmem>>, %arg8: memref<1x64xf32, #tpu.memory_space<vmem>>, %arg9: memref<64x32xf32, #tpu.memory_space<vmem>>, %arg10: memref<1x32xf32, #tpu.memory_space<vmem>>, %arg11: memref<32x32xf32, #tpu.memory_space<vmem>>, %arg12: memref<1x32xf32, #tpu.memory_space<vmem>>, %arg13: memref<32x1xf32, #tpu.memory_space<vmem>>, %arg14: memref<1x1xf32, #tpu.memory_space<vmem>>, %arg15: memref<2x1xf32, #tpu.memory_space<vmem>>) attributes {dimension_semantics = [], scalar_prefetch = 0 : i64, scratch_operands = 0 : i64, tpu.core_type = #tpu.core_type<tc>} {
    %c0 = arith.constant 0 : index
    %c0_0 = arith.constant 0 : index
    %0 = vector.load %arg0[%c0, %c0_0] : memref<2x32xf32, #tpu.memory_space<vmem>>, vector<2x32xf32>
    %c0_1 = arith.constant 0 : index
    %c0_2 = arith.constant 0 : index
    %1 = vector.load %arg1[%c0_1, %c0_2] : memref<32x128xf32, #tpu.memory_space<vmem>>, vector<32x128xf32>
    %cst = arith.constant dense<0.000000e+00> : vector<2x128xf32>
    %2 = tpu.matmul %0, %1, %cst {dimension_numbers = #tpu.dot_dimension_numbers<[1], [0], [0], [1], [0, 0, 1, 1], [], []>} : vector<2x32xf32>, vector<32x128xf32>, vector<2x128xf32> -> vector<2x128xf32>
    %c0_3 = arith.constant 0 : index
    %c0_4 = arith.constant 0 : index
    %3 = vector.load %arg2[%c0_3, %c0_4] : memref<1x128xf32, #tpu.memory_space<vmem>>, vector<1x128xf32>
    %4 = vector.broadcast %3 : vector<1x128xf32> to vector<2x128xf32>
    %5 = arith.addf %2, %4 : vector<2x128xf32>
    %6 = vector.extract_strided_slice %5 {offsets = [0, 0], sizes = [2, 32], strides = [1, 1]} : vector<2x128xf32> to vector<2x32xf32>
    %7 = vector.extract_strided_slice %5 {offsets = [0, 32], sizes = [2, 32], strides = [1, 1]} : vector<2x128xf32> to vector<2x32xf32>
    %c0_5 = arith.constant 0 : index
    %c0_6 = arith.constant 0 : index
    %c0_7 = arith.constant 0 : index
    %8 = vector.load %arg3[%c0_5, %c0_6, %c0_7] : memref<2x32x128xf32, #tpu.memory_space<vmem>>, vector<1x32x128xf32>
    %9 = vector.shape_cast %8 : vector<1x32x128xf32> to vector<32x128xf32>
    %cst_8 = arith.constant dense<0.000000e+00> : vector<2x128xf32>
    %10 = tpu.matmul %6, %9, %cst_8 {dimension_numbers = #tpu.dot_dimension_numbers<[1], [0], [0], [1], [0, 0, 1, 1], [], []>} : vector<2x32xf32>, vector<32x128xf32>, vector<2x128xf32> -> vector<2x128xf32>
    %cst_9 = arith.constant dense<0.000000e+00> : vector<2x128xf32>
    %11 = tpu.matmul %7, %9, %cst_9 {dimension_numbers = #tpu.dot_dimension_numbers<[1], [0], [0], [1], [0, 0, 1, 1], [], []>} : vector<2x32xf32>, vector<32x128xf32>, vector<2x128xf32> -> vector<2x128xf32>
    %12 = vector.extract_strided_slice %5 {offsets = [0, 64], sizes = [2, 32], strides = [1, 1]} : vector<2x128xf32> to vector<2x32xf32>
    %13 = vector.extract_strided_slice %5 {offsets = [0, 96], sizes = [2, 32], strides = [1, 1]} : vector<2x128xf32> to vector<2x32xf32>
    %c1 = arith.constant 1 : index
    %c0_10 = arith.constant 0 : index
    %c0_11 = arith.constant 0 : index
    %14 = vector.load %arg3[%c1, %c0_10, %c0_11] : memref<2x32x128xf32, #tpu.memory_space<vmem>>, vector<1x32x128xf32>
    %15 = vector.shape_cast %14 : vector<1x32x128xf32> to vector<32x128xf32>
    %cst_12 = arith.constant dense<0.000000e+00> : vector<2x128xf32>
    %16 = tpu.matmul %12, %15, %cst_12 {dimension_numbers = #tpu.dot_dimension_numbers<[1], [0], [0], [1], [0, 0, 1, 1], [], []>} : vector<2x32xf32>, vector<32x128xf32>, vector<2x128xf32> -> vector<2x128xf32>
    %cst_13 = arith.constant dense<0.000000e+00> : vector<2x128xf32>
    %17 = tpu.matmul %13, %15, %cst_13 {dimension_numbers = #tpu.dot_dimension_numbers<[1], [0], [0], [1], [0, 0, 1, 1], [], []>} : vector<2x32xf32>, vector<32x128xf32>, vector<2x128xf32> -> vector<2x128xf32>
    %18 = arith.mulf %10, %16 : vector<2x128xf32>
    %19 = arith.mulf %11, %17 : vector<2x128xf32>
    %20 = arith.subf %18, %19 : vector<2x128xf32>
    %21 = arith.mulf %10, %17 : vector<2x128xf32>
    %22 = arith.mulf %11, %16 : vector<2x128xf32>
    %23 = arith.addf %21, %22 : vector<2x128xf32>
    %c0_14 = arith.constant 0 : index
    %c0_15 = arith.constant 0 : index
    %24 = vector.load %arg4[%c0_14, %c0_15] : memref<128x16xf32, #tpu.memory_space<vmem>>, vector<128x16xf32>
    %cst_16 = arith.constant dense<0.000000e+00> : vector<2x16xf32>
    %25 = tpu.matmul %20, %24, %cst_16 {dimension_numbers = #tpu.dot_dimension_numbers<[1], [0], [0], [1], [0, 0, 1, 1], [], []>} : vector<2x128xf32>, vector<128x16xf32>, vector<2x16xf32> -> vector<2x16xf32>
    %cst_17 = arith.constant 1.250000e-01 : f32
    %26 = vector.broadcast %cst_17 : f32 to vector<2x16xf32>
    %27 = arith.mulf %25, %26 : vector<2x16xf32>
    %cst_18 = arith.constant dense<0.000000e+00> : vector<2x16xf32>
    %28 = tpu.matmul %23, %24, %cst_18 {dimension_numbers = #tpu.dot_dimension_numbers<[1], [0], [0], [1], [0, 0, 1, 1], [], []>} : vector<2x128xf32>, vector<128x16xf32>, vector<2x16xf32> -> vector<2x16xf32>
    %cst_19 = arith.constant 1.250000e-01 : f32
    %29 = vector.broadcast %cst_19 : f32 to vector<2x16xf32>
    %30 = arith.mulf %28, %29 : vector<2x16xf32>
    %c0_20 = arith.constant 0 : index
    %c0_21 = arith.constant 0 : index
    %31 = vector.load %arg5[%c0_20, %c0_21] : memref<64x72xf32, #tpu.memory_space<vmem>>, vector<64x72xf32>
    %c0_22 = arith.constant 0 : index
    %c0_23 = arith.constant 0 : index
    %32 = vector.load %arg6[%c0_22, %c0_23] : memref<1x72xf32, #tpu.memory_space<vmem>>, vector<1x72xf32>
    %33 = vector.extract_strided_slice %31 {offsets = [0, 0], sizes = [32, 72], strides = [1, 1]} : vector<64x72xf32> to vector<32x72xf32>
    %cst_24 = arith.constant dense<0.000000e+00> : vector<2x72xf32>
    %34 = tpu.matmul %0, %33, %cst_24 {dimension_numbers = #tpu.dot_dimension_numbers<[1], [0], [0], [1], [0, 0, 1, 1], [], []>} : vector<2x32xf32>, vector<32x72xf32>, vector<2x72xf32> -> vector<2x72xf32>
    %35 = vector.extract_strided_slice %31 {offsets = [32, 0], sizes = [16, 72], strides = [1, 1]} : vector<64x72xf32> to vector<16x72xf32>
    %cst_25 = arith.constant dense<0.000000e+00> : vector<2x72xf32>
    %36 = tpu.matmul %27, %35, %cst_25 {dimension_numbers = #tpu.dot_dimension_numbers<[1], [0], [0], [1], [0, 0, 1, 1], [], []>} : vector<2x16xf32>, vector<16x72xf32>, vector<2x72xf32> -> vector<2x72xf32>
    %37 = arith.addf %34, %36 : vector<2x72xf32>
    %38 = vector.extract_strided_slice %31 {offsets = [48, 0], sizes = [16, 72], strides = [1, 1]} : vector<64x72xf32> to vector<16x72xf32>
    %cst_26 = arith.constant dense<0.000000e+00> : vector<2x72xf32>
    %39 = tpu.matmul %30, %38, %cst_26 {dimension_numbers = #tpu.dot_dimension_numbers<[1], [0], [0], [1], [0, 0, 1, 1], [], []>} : vector<2x16xf32>, vector<16x72xf32>, vector<2x72xf32> -> vector<2x72xf32>
    %40 = arith.addf %37, %39 : vector<2x72xf32>
    %41 = vector.broadcast %32 : vector<1x72xf32> to vector<2x72xf32>
    %42 = arith.addf %40, %41 : vector<2x72xf32>
    %cst_27 = arith.constant 0.000000e+00 : f32
    %43 = vector.broadcast %cst_27 : f32 to vector<2x72xf32>
    %44 = arith.maximumf %42, %43 : vector<2x72xf32>
    %c0_28 = arith.constant 0 : index
    %c0_29 = arith.constant 0 : index
    %45 = vector.load %arg7[%c0_28, %c0_29] : memref<72x64xf32, #tpu.memory_space<vmem>>, vector<72x64xf32>
    %c0_30 = arith.constant 0 : index
    %c0_31 = arith.constant 0 : index
    %46 = vector.load %arg8[%c0_30, %c0_31] : memref<1x64xf32, #tpu.memory_space<vmem>>, vector<1x64xf32>
    %cst_32 = arith.constant dense<0.000000e+00> : vector<2x64xf32>
    %47 = tpu.matmul %44, %45, %cst_32 {dimension_numbers = #tpu.dot_dimension_numbers<[1], [0], [0], [1], [0, 0, 1, 1], [], []>} : vector<2x72xf32>, vector<72x64xf32>, vector<2x64xf32> -> vector<2x64xf32>
    %48 = vector.broadcast %46 : vector<1x64xf32> to vector<2x64xf32>
    %49 = arith.addf %47, %48 : vector<2x64xf32>
    %cst_33 = arith.constant 0.000000e+00 : f32
    %50 = vector.broadcast %cst_33 : f32 to vector<2x64xf32>
    %51 = arith.maximumf %49, %50 : vector<2x64xf32>
    %c0_34 = arith.constant 0 : index
    %c0_35 = arith.constant 0 : index
    %52 = vector.load %arg9[%c0_34, %c0_35] : memref<64x32xf32, #tpu.memory_space<vmem>>, vector<64x32xf32>
    %c0_36 = arith.constant 0 : index
    %c0_37 = arith.constant 0 : index
    %53 = vector.load %arg10[%c0_36, %c0_37] : memref<1x32xf32, #tpu.memory_space<vmem>>, vector<1x32xf32>
    %cst_38 = arith.constant dense<0.000000e+00> : vector<2x32xf32>
    %54 = tpu.matmul %51, %52, %cst_38 {dimension_numbers = #tpu.dot_dimension_numbers<[1], [0], [0], [1], [0, 0, 1, 1], [], []>} : vector<2x64xf32>, vector<64x32xf32>, vector<2x32xf32> -> vector<2x32xf32>
    %55 = vector.broadcast %53 : vector<1x32xf32> to vector<2x32xf32>
    %56 = arith.addf %54, %55 : vector<2x32xf32>
    %cst_39 = arith.constant 0.000000e+00 : f32
    %57 = vector.broadcast %cst_39 : f32 to vector<2x32xf32>
    %58 = arith.maximumf %56, %57 : vector<2x32xf32>
    %c0_40 = arith.constant 0 : index
    %c0_41 = arith.constant 0 : index
    %59 = vector.load %arg11[%c0_40, %c0_41] : memref<32x32xf32, #tpu.memory_space<vmem>>, vector<32x32xf32>
    %c0_42 = arith.constant 0 : index
    %c0_43 = arith.constant 0 : index
    %60 = vector.load %arg12[%c0_42, %c0_43] : memref<1x32xf32, #tpu.memory_space<vmem>>, vector<1x32xf32>
    %cst_44 = arith.constant dense<0.000000e+00> : vector<2x32xf32>
    %61 = tpu.matmul %58, %59, %cst_44 {dimension_numbers = #tpu.dot_dimension_numbers<[1], [0], [0], [1], [0, 0, 1, 1], [], []>} : vector<2x32xf32>, vector<32x32xf32>, vector<2x32xf32> -> vector<2x32xf32>
    %62 = vector.broadcast %60 : vector<1x32xf32> to vector<2x32xf32>
    %63 = arith.addf %61, %62 : vector<2x32xf32>
    %cst_45 = arith.constant 0.000000e+00 : f32
    %64 = vector.broadcast %cst_45 : f32 to vector<2x32xf32>
    %65 = arith.maximumf %63, %64 : vector<2x32xf32>
    %c0_46 = arith.constant 0 : index
    %c0_47 = arith.constant 0 : index
    %66 = vector.load %arg13[%c0_46, %c0_47] : memref<32x1xf32, #tpu.memory_space<vmem>>, vector<32x1xf32>
    %c0_48 = arith.constant 0 : index
    %c0_49 = arith.constant 0 : index
    %67 = vector.load %arg14[%c0_48, %c0_49] : memref<1x1xf32, #tpu.memory_space<vmem>>, vector<1x1xf32>
    %cst_50 = arith.constant dense<0.000000e+00> : vector<2x1xf32>
    %68 = tpu.matmul %65, %66, %cst_50 {dimension_numbers = #tpu.dot_dimension_numbers<[1], [0], [0], [1], [0, 0, 1, 1], [], []>} : vector<2x32xf32>, vector<32x1xf32>, vector<2x1xf32> -> vector<2x1xf32>
    %69 = vector.broadcast %67 : vector<1x1xf32> to vector<2x1xf32>
    %70 = arith.addf %68, %69 : vector<2x1xf32>
    %c0_51 = arith.constant 0 : index
    %c0_52 = arith.constant 0 : index
    %71 = vector.load %arg15[%c0_51, %c0_52] : memref<2x1xf32, #tpu.memory_space<vmem>>, vector<2x1xf32>
    tpu.vector_store %arg15[%c0_51, %c0_52], %70 {strides = array<i32>} : memref<2x1xf32, #tpu.memory_space<vmem>>, vector<2x1xf32>,
    return
  }
}

</mosaic_0001>

<bundles_post_ra>
// kernel: fused_forward.1
= control target key start
LH: loop header
LB: loop body
LE: loop exit
PB: predicated region body
PF: predicated region fallthrough
CT: control target
= control target key end

     0   :  { %v1662_v0 = vmov 0.0|0.0   ;;  %vm1663_vm0 = vmmov 0   ;;  %v1664_v4 = vmov 0.0   ;;  %vm64_vm1 = vcmask 261120   ;;  %s1666_s29 = smov 96   ;;  %s2038_s1 = inlined_call_operand.vmem [shape: f32[32,128], index: 1, kind: input, shape index: {}]   ;;  %s2039_s3 = inlined_call_operand.vmem [shape: f32[2,32,128], index: 3, kind: input, shape index: {}]   ;;  %s2040_s0 = inlined_call_operand.vmem [shape: f32[2,32], index: 0, kind: input, shape index: {}]   ;;  %s2041_s2 = inlined_call_operand.vmem [shape: f32[1,128], index: 2, kind: input, shape index: {}]   ;;  %s2042_s4 = inlined_call_operand.vmem [shape: f32[128,16], index: 4, kind: input, shape index: {}]   ;;  %s2043_s5 = inlined_call_operand.vmem [shape: f32[64,72], index: 5, kind: input, shape index: {}]   ;;  %s2044_s7 = inlined_call_operand.vmem [shape: f32[72,64], index: 7, kind: input, shape index: {}]   ;;  %s2045_s9 = inlined_call_operand.vmem [shape: f32[64,32], index: 9, kind: input, shape index: {}]   ;;  %s2046_s6 = inlined_call_operand.vmem [shape: f32[1,72], index: 6, kind: input, shape index: {}]   ;;  %s2047_s8 = inlined_call_operand.vmem [shape: f32[1,64], index: 8, kind: input, shape index: {}]   ;;  %s2048_s11 = inlined_call_operand.vmem [shape: f32[32,32], index: 11, kind: input, shape index: {}]   ;;  %s2049_s13 = inlined_call_operand.vmem [shape: f32[32,1], index: 13, kind: input, shape index: {}]   ;;  %s2050_s10 = inlined_call_operand.vmem [shape: f32[1,32], index: 10, kind: input, shape index: {}]   ;;  %s2051_s14 = inlined_call_operand.<no memory space> [shape: f32[1,1], index: 14, kind: input, shape index: {}]   ;;  %s2052_s12 = inlined_call_operand.vmem [shape: f32[1,32], index: 12, kind: input, shape index: {}]   ;;  %s2053_s15 = inlined_call_operand.vmem [shape: f32[2,1], index: 15, kind: output, shape index: {}]  }
   0x1   :  { %1530 = vmatprep.subr.bf16.mxu0 %v1662_v0  ;;  %v53_v1 = vld [vmem:[%s2038_s1] sm:$0xff]  ;;  %v54_v2 = vld [vmem:[%s2038_s1 + $0x8] sm:$0xff]  ;;  %v55_v3 = vld [vmem:[%s2038_s1 + $0x10] sm:$0xff]  ;;  %1326 = vmatprep.mubr.msk.f32.mxu0 %vm1663_vm0, %v1664_v4  ;;  %vm615_vm2 = vcmask 130048   ;;  %vm857_vm3 = vcmask 588800   ;;  %vm947_vm4 = vcmask 523264  }
   0x2   :  { %v1531_v5 = vpack.c.bf16 %v54_v2, %v53_v1  ;;  %v56_v6 = vld [vmem:[%s2038_s1 + $0x18] sm:$0xff]  ;;  %1536 = vmatprep.subr.bf16.mxu1 %v1662_v0  ;;  %v138_v7 = vld [vmem:[%s2039_s3] sm:$0xff]  ;;  %1337 = vmatprep.mubr.msk.f32.mxu1 %vm1663_vm0, %v1664_v4  ;;  %v139_v8 = vld [vmem:[%s2039_s3 + $0x8] sm:$0xff]  ;;  %s1667_s1 = smov 64   ;;  %vm1191_vm5 = vcmask 1024  }
   0x3   :  { %v1534_v9 = vpack.c.bf16 %v56_v6, %v55_v3  ;;  %v1537_v10 = vpack.c.bf16 %v139_v8, %v138_v7  ;;  %v1777_v11 = vld [vmem:[%s2040_s0] sm:$0x3]  ;;  %v140_v12 = vld [vmem:[%s2039_s3 + $0x10] sm:$0xff]  ;;  %v141_v13 = vld [vmem:[%s2039_s3 + $0x18] sm:$0xff] }
   0x4   :  { %1532 = vmatpush3.bf16.msra.mxu0 %v1531_v5  ;;  %v1540_v14 = vpack.c.bf16 %v141_v13, %v140_v12  ;;  %v1197_v15 = vld [vmem:[%s2041_s2] ss:$0 sm:$0xff]  ;;  %v1202_v17 = vld [vmem:[%s2039_s3 + $0x28] sm:$0xff]  ;;  %v1203_v22 = vld [vmem:[%s2039_s3 + $0x30] sm:$0xff]  ;;  %s1665_s2 = smov 32  }
   0x5   :  { %1533 = vmatprep.subr.bf16.mxu0 %v1662_v0  ;;  %1538 = vmatpush3.bf16.msra.mxu1 %v1537_v10  ;;  %v1201_v16 = vld [vmem:[%s2039_s3 + $0x20] sm:$0xff]  ;;  %v1204_v23 = vld [vmem:[%s2039_s3 + $0x38] sm:$0xff]  ;;  %v449_v26 = vld [vmem:[%s2042_s4 + $0x8] sm:$0xff] }
   0x6   :  { %1539 = vmatprep.subr.bf16.mxu1 %v1662_v0  ;;  %v1549_v21 = vpack.c.bf16 %v1202_v17, %v1201_v16  ;;  %v1552_v24 = vpack.c.bf16 %v1204_v23, %v1203_v22  ;;  %v448_v25 = vld [vmem:[%s2042_s4] sm:$0xff]  ;;  %v450_v29 = vld [vmem:[%s2042_s4 + $0x10] sm:$0xff]  ;;  %v451_v30 = vld [vmem:[%s2042_s4 + $0x18] sm:$0xff] }
   0x7   :  { %v1561_v28 = vpack.c.bf16 %v449_v26, %v448_v25  ;;  %v1564_v32 = vpack.c.bf16 %v451_v30, %v450_v29  ;;  %v452_v33 = vld [vmem:[%s2042_s4 + $0x20] sm:$0xff]  ;;  %v453_v34 = vld [vmem:[%s2042_s4 + $0x28] sm:$0xff]  ;;  %v454_v37 = vld [vmem:[%s2042_s4 + $0x30] sm:$0xff] }
   0x8   :  { %1535 = vmatpush3.bf16.msra.mxu0 %v1534_v9  ;;  %v1567_v36 = vpack.c.bf16 %v453_v34, %v452_v33  ;;  %v455_v38 = vld [vmem:[%s2042_s4 + $0x38] sm:$0xff]  ;;  %v456_v40 = vld [vmem:[%s2042_s4 + $0x40] sm:$0xff]  ;;  %v457_v41 = vld [vmem:[%s2042_s4 + $0x48] sm:$0xff] }
   0x9   :  { %1542 = vmatprep.subr.bf16.mxu0 %v1662_v0  ;;  %1541 = vmatpush3.bf16.msra.mxu1 %v1540_v14  ;;  %v1570_v39 = vpack.c.bf16 %v455_v38, %v454_v37  ;;  %v1573_v42 = vpack.c.bf16 %v457_v41, %v456_v40  ;;  %v458_v43 = vld [vmem:[%s2042_s4 + $0x50] sm:$0xff]  ;;  %v459_v44 = vld [vmem:[%s2042_s4 + $0x58] sm:$0xff]  ;;  %v460_v46 = vld [vmem:[%s2042_s4 + $0x60] sm:$0xff] }
   0xa   :  { %1548 = vmatprep.subr.bf16.mxu1 %v1662_v0  ;;  %v1576_v45 = vpack.c.bf16 %v459_v44, %v458_v43  ;;  %v461_v47 = vld [vmem:[%s2042_s4 + $0x68] sm:$0xff]  ;;  %v462_v49 = vld [vmem:[%s2042_s4 + $0x70] sm:$0xff]  ;;  %v463_v50 = vld [vmem:[%s2042_s4 + $0x78] sm:$0xff] }
   0xb   :  { %1327 = vmatmul.mubr.msk.f32.vlgmr.msra.gmra.mrb[0].mxu0 %vm64_vm1, %v1777_v11  ;;  %v1579_v48 = vpack.c.bf16 %v461_v47, %v460_v46  ;;  %v1582_v51 = vpack.c.bf16 %v463_v50, %v462_v49  ;;  %v610_v60 = vld [vmem:[%s2043_s5 + $0x20] sm:$0xff]  ;;  %v611_v61 = vld [vmem:[%s2043_s5 + $0x28] sm:$0xff]  ;;  %v612_v7 = vld [vmem:[%s2043_s5 + $0x30] sm:$0xff] }
   0xc   :  { %1544 = vmatpush3.bf16.msra.mxu0 %v1537_v10  ;;  %1348 = vmatprep.mubr.msk.f32.mxu0 %vm1663_vm0, %v1664_v4  ;;  %v1609_v3 = vpack.c.bf16 %v611_v61, %v610_v60  ;;  %v613_v8 = vld [vmem:[%s2043_s5 + $0x38] sm:$0xff]  ;;  %v606_v10 = vld [vmem:[%s2043_s5] sm:$0xff]  ;;  %v607_v12 = vld [vmem:[%s2043_s5 + $0x8] sm:$0xff] }
   0xd   :  { %1545 = vmatprep.subr.bf16.mxu0 %v1662_v0  ;;  %v1618_v9 = vpack.c.bf16 %v613_v8, %v612_v7  ;;  %v841_v13 = vld [vmem:[%s2044_s7] sm:$0xff]  ;;  %v1612_v17 = vpack.c.bf16 %v607_v12, %v606_v10  ;;  %v608_v22 = vld [vmem:[%s2043_s5 + $0x10] sm:$0xff]  ;;  %v609_v23 = vld [vmem:[%s2043_s5 + $0x18] sm:$0xff] }
   0xe   :  { %v1615_v25 = vpack.c.bf16 %v609_v23, %v608_v22  ;;  %v843_v26 = vld [vmem:[%s2044_s7 + $0x10] sm:$0xff]  ;;  %v845_v29 = vld [vmem:[%s2044_s7 + $0x20] sm:$0xff]  ;;  %v1023_v60 = vld [vmem:[%s2048_s11 + $0x8] sm:$0xff] }
   0xf   :  { %v849_v34 = vld [vmem:[%s2044_s7 + $0x40] sm:$0xff]  ;;  %v934_v37 = vld [vmem:[%s2045_s9 + $0x10] sm:$0xff] }
  0x10   :  { %1547 = vmatpush3.bf16.msra.mxu0 %v1540_v14  ;;  %v842_v14 = vld [vmem:[%s2044_s7 + $0x8] sm:$0xff]  ;;  %v936_v41 = vld [vmem:[%s2045_s9 + $0x20] sm:$0xff] }
  0x11   :  { %1554 = vmatprep.subr.bf16.mxu0 %v1662_v0  ;;  %v1107_v7 = vld [vmem:[%s2049_s13] sm:$0xff] }
  0xde   :  { %v134_v18 = vpop.f32.mrb[0].mxu0 }
  0xdf   :  { %v135_v19 = vadd.f32 %v1197_v15, %v134_v18  ;;  %v1328_v20 = vpop.f32.mrb[1].mxu0 }
  0xe1   :  { %368 = vrot.lane.b32.xlu1 %v135_v19, %s1665_s2  ;;  %215 = vrot.lane.b32.xlu0 %v135_v19, %s1666_s29 }
  0xe2   :  { %1338 = vmatmul.mubr.msk.f32.vlgmr.msra.gmra.mrb[0].mxu1 %vm64_vm1, %v135_v19 }
  0xe3   :  { %1550 = vmatpush3.bf16.msra.mxu1 %v1549_v21  ;;  %1359 = vmatprep.mubr.msk.f32.mxu1 %vm1663_vm0, %v1664_v4 }
  0xe4   :  { %1551 = vmatprep.subr.bf16.mxu1 %v1662_v0 }
  0xe5   :  { %294 = vrot.lane.b32.xlu0 %v135_v19, %s1667_s1 }
  0xe7   :  { %1553 = vmatpush3.bf16.msra.mxu1 %v1552_v24 }
  0xe8   :  { %1560 = vmatprep.subr.bf16.mxu1 %v1662_v0 }
 0x153   :  { %v216_v27 = vpop.permute.xlu0 %215  ;;  %v369_v35 = vpop.permute.xlu1 %368 }
 0x154   :  { %1349 = vmatmul.mubr.msk.f32.vlgmr.msra.gmra.mrb[2].mxu0 %vm64_vm1, %v216_v27  ;;  %v844_v27 = vld [vmem:[%s2044_s7 + $0x18] sm:$0xff] }
 0x155   :  { %1556 = vmatpush3.bf16.msra.mxu0 %v1549_v21  ;;  %1370 = vmatprep.mubr.msk.f32.mxu0 %vm1663_vm0, %v1664_v4 }
 0x156   :  { %1557 = vmatprep.subr.bf16.mxu0 %v1662_v0 }
 0x157   :  { %v295_v31 = vpop.permute.xlu0 %294 }
 0x158   :  { %1360 = vmatmul.mubr.msk.f32.vlgmr.msra.gmra.mrb[2].mxu1 %vm64_vm1, %v295_v31  ;;  %v847_v31 = vld [vmem:[%s2044_s7 + $0x30] sm:$0xff] }
 0x159   :  { %1559 = vmatpush3.bf16.msra.mxu0 %v1552_v24  ;;  %1562 = vmatpush3.bf16.msra.mxu1 %v1561_v28  ;;  %v1621_v24 = vpack.c.bf16 %v842_v14, %v841_v13 }
 0x15a   :  { %1584 = vmatprep.subr.bf16.mxu0 %v1662_v0  ;;  %1563 = vmatprep.subr.bf16.mxu1 %v1662_v0 }
 0x15b   :  { %1405 = vmatprep.mubr.msk.f32.mxu1 %vm1663_vm0, %v1664_v4 }
 0x15c   :  { %1371 = vmatmul.mubr.msk.f32.vlgmr.msra.gmra.mrb[4].mxu0 %vm64_vm1, %v369_v35  ;;  %v932_v35 = vld [vmem:[%s2045_s9] sm:$0xff] }
 0x15d   :  { %1586 = vmatpush3.bf16.msra.mxu0 %v1561_v28  ;;  %1565 = vmatpush3.bf16.msra.mxu1 %v1564_v32  ;;  %v1624_v28 = vpack.c.bf16 %v844_v27, %v843_v26 }
 0x15e   :  { %1587 = vmatprep.subr.bf16.mxu0 %v1662_v0  ;;  %1566 = vmatprep.subr.bf16.mxu1 %v1662_v0 }
 0x15f   :  { %1440 = vmatprep.mubr.msk.f32.mxu0 %vm1663_vm0, %v1664_v4 }
 0x161   :  { %1589 = vmatpush3.bf16.msra.mxu0 %v1564_v32  ;;  %1568 = vmatpush3.bf16.msra.mxu1 %v1567_v36  ;;  %v848_v32 = vld [vmem:[%s2044_s7 + $0x38] sm:$0xff] }
 0x162   :  { %1590 = vmatprep.subr.bf16.mxu0 %v1662_v0  ;;  %1569 = vmatprep.subr.bf16.mxu1 %v1662_v0  ;;  %v1630_v33 = vpack.c.bf16 %v848_v32, %v847_v31 }
 0x165   :  { %1592 = vmatpush3.bf16.msra.mxu0 %v1567_v36  ;;  %1571 = vmatpush3.bf16.msra.mxu1 %v1570_v39  ;;  %v933_v36 = vld [vmem:[%s2045_s9 + $0x8] sm:$0xff] }
 0x166   :  { %1593 = vmatprep.subr.bf16.mxu0 %v1662_v0  ;;  %1572 = vmatprep.subr.bf16.mxu1 %v1662_v0  ;;  %v1633_v38 = vpack.c.bf16 %v933_v36, %v932_v35 }
 0x169   :  { %1595 = vmatpush3.bf16.msra.mxu0 %v1570_v39  ;;  %1574 = vmatpush3.bf16.msra.mxu1 %v1573_v42  ;;  %v935_v39 = vld [vmem:[%s2045_s9 + $0x18] sm:$0xff] }
 0x16a   :  { %1596 = vmatprep.subr.bf16.mxu0 %v1662_v0  ;;  %1575 = vmatprep.subr.bf16.mxu1 %v1662_v0  ;;  %v1636_v40 = vpack.c.bf16 %v935_v39, %v934_v37 }
 0x16d   :  { %1598 = vmatpush3.bf16.msra.mxu0 %v1573_v42  ;;  %1577 = vmatpush3.bf16.msra.mxu1 %v1576_v45  ;;  %v937_v42 = vld [vmem:[%s2045_s9 + $0x28] sm:$0xff] }
 0x16e   :  { %1599 = vmatprep.subr.bf16.mxu0 %v1662_v0  ;;  %1578 = vmatprep.subr.bf16.mxu1 %v1662_v0  ;;  %v1639_v43 = vpack.c.bf16 %v937_v42, %v936_v41 }
 0x171   :  { %1601 = vmatpush3.bf16.msra.mxu0 %v1576_v45  ;;  %1580 = vmatpush3.bf16.msra.mxu1 %v1579_v48 }
 0x172   :  { %1602 = vmatprep.subr.bf16.mxu0 %v1662_v0  ;;  %1581 = vmatprep.subr.bf16.mxu1 %v1662_v0 }
 0x175   :  { %1604 = vmatpush3.bf16.msra.mxu0 %v1579_v48  ;;  %1583 = vmatpush3.bf16.msra.mxu1 %v1582_v51 }
 0x176   :  { %1605 = vmatprep.subr.bf16.mxu0 %v1662_v0  ;;  %1608 = vmatprep.subr.bf16.mxu1 %v1662_v0 }
 0x179   :  { %1607 = vmatpush3.bf16.msra.mxu0 %v1582_v51  ;;  %v1210_v51 = vld [vmem:[%s2046_s6] ss:$0 sm:$0xff] }
 0x17a   :  { %1617 = vmatprep.subr.bf16.mxu0 %v1662_v0 }
 0x1b5   :  { %v211_v52 = vpop.f32.mrb[0].mxu1 }
 0x1b6   :  { %v1339_v53 = vpop.f32.mrb[1].mxu1 }
 0x227   :  { %v285_v54 = vpop.f32.mrb[2].mxu0 }
 0x228   :  { %v1350_v55 = vpop.f32.mrb[3].mxu0 }
 0x229   :  { %v938_v55 = vld [vmem:[%s2045_s9 + $0x30] sm:$0xff] }
 0x22b   :  { %v364_v56 = vpop.f32.mrb[2].mxu1 }
 0x22c   :  { %v442_v57 = vmul.f32 %v364_v56, %v211_v52  ;;  %v446_v58 = vmul.f32 %v364_v56, %v285_v54  ;;  %v1361_v59 = vpop.f32.mrb[3].mxu1  ;;  %v939_v56 = vld [vmem:[%s2045_s9 + $0x38] sm:$0xff] }
 0x22d   :  { %v1022_v59 = vld [vmem:[%s2048_s11] sm:$0xff] }
 0x22f   :  { %v438_v62 = vpop.f32.mrb[4].mxu0 }
 0x230   :  { %v443_v63 = vmul.f32 %v438_v62, %v285_v54  ;;  %v445_v1 = vmul.f32 %v438_v62, %v211_v52  ;;  %v1372_v2 = vpop.f32.mrb[5].mxu0 }
 0x232   :  { %v444_v5 = vsub.f32 %v442_v57, %v443_v63  ;;  %v447_v6 = vadd.f32 %v446_v58, %v445_v1  ;;  %v1642_v57 = vpack.c.bf16 %v939_v56, %v938_v55  ;;  %v1211_v58 = vld [vmem:[%s2047_s8] ss:$0 sm:$0xff]  ;;  %v1645_v1 = vpack.c.bf16 %v1023_v60, %v1022_v59 }
 0x234   :  { %1406 = vmatmul.mubr.f32.vlgmr.msra.gmra.mrb[4].mxu1 %v444_v5  ;;  %1441 = vmatmul.mubr.f32.vlgmr.msra.gmra.mrb[6].mxu0 %v447_v6  ;;  %v1025_v5 = vld [vmem:[%s2048_s11 + $0x18] sm:$0xff] }
 0x235   :  { %1610 = vmatpush3.bf16.msra.mxu1 %v1609_v3  ;;  %1447 = vmatprep.mubr.msk.f32.mxu1 %vm1663_vm0, %v1664_v4  ;;  %v1024_v3 = vld [vmem:[%s2048_s11 + $0x10] sm:$0xff] }
 0x236   :  { %1611 = vmatprep.subr.bf16.mxu1 %v1662_v0  ;;  %1465 = vmatprep.mubr.msk.f32.mxu0 %vm1663_vm0, %v1664_v4  ;;  %v1648_v6 = vpack.c.bf16 %v1025_v5, %v1024_v3 }
 0x237   :  { %1619 = vmatpush3.bf16.msra.mxu0 %v1618_v9  ;;  %v1213_v9 = vld [vmem:[%s2050_s10] ss:$0 sm:$0xff] }
 0x238   :  { %1620 = vmatprep.subr.bf16.mxu0 %v1662_v0 }
 0x307   :  { %v530_v15 = vpop.f32.mrb[4].mxu1  ;;  %v601_v16 = vpop.f32.mrb[6].mxu0 }
 0x308   :  { %v534_v18 = vmul.f32 0.125, %v530_v15  ;;  %v605_v19 = vmul.f32 0.125, %v601_v16  ;;  %v1407_v20 = vpop.f32.mrb[5].mxu1  ;;  %v1442_v21 = vpop.f32.mrb[7].mxu0  ;;  %v1109_v15 = vld [vmem:[%s2049_s13 + $0x10] sm:$0xff]  ;;  %v1110_v16 = vld [vmem:[%s2049_s13 + $0x18] sm:$0xff] }
 0x30a   :  { %1448 = vmatmul.mubr.msk.f32.vlgmr.msra.gmra.mrb[6].mxu1 %vm615_vm2, %v534_v18  ;;  %1466 = vmatmul.mubr.msk.f32.vlgmr.msra.gmra.mrb[8].mxu0 %vm615_vm2, %v605_v19  ;;  %v1215_v18 = vld [vmem:[%s2052_s12] ss:$0 sm:$0xff] }
 0x30b   :  { %1613 = vmatpush3.bf16.msra.mxu1 %v1612_v17  ;;  %1458 = vmatprep.mubr.msk.f32.mxu1 %vm1663_vm0, %v1664_v4  ;;  %v1654_v17 = vpack.c.bf16 %v1110_v16, %v1109_v15 }
 0x30c   :  { %1614 = vmatprep.subr.bf16.mxu1 %v1662_v0  ;;  %1622 = vmatpush3.bf16.msra.mxu0 %v1621_v24 }
 0x30d   :  { %1623 = vmatprep.subr.bf16.mxu0 %v1662_v0  ;;  %1486 = vmatprep.mubr.msk.f32.mxu0 %vm1663_vm0, %v1664_v4 }
 0x30f   :  { %1616 = vmatpush3.bf16.msra.mxu1 %v1615_v25 }
 0x310   :  { %1632 = vmatprep.subr.bf16.mxu1 %v1662_v0  ;;  %1625 = vmatpush3.bf16.msra.mxu0 %v1624_v28 }
 0x311   :  { %1626 = vmatprep.subr.bf16.mxu0 %v1662_v0 }
 0x312   :  { %1459 = vmatmul.mubr.msk.f32.vlgmr.msra.gmra.mrb[8].mxu1 %vm64_vm1, %v1777_v11  ;;  %v846_v11 = vld [vmem:[%s2044_s7 + $0x28] sm:$0xff] }
 0x313   :  { %1505 = vmatprep.mubr.msk.f32.mxu1 %vm1663_vm0, %v1664_v4  ;;  %v1627_v30 = vpack.c.bf16 %v846_v11, %v845_v29  ;;  %1634 = vmatpush3.bf16.msra.mxu1 %v1633_v38 }
 0x314   :  { %1635 = vmatprep.subr.bf16.mxu1 %v1662_v0 }
 0x315   :  { %1628 = vmatpush3.bf16.msra.mxu0 %v1627_v30 }
 0x316   :  { %1629 = vmatprep.subr.bf16.mxu0 %v1662_v0 }
 0x317   :  { %1637 = vmatpush3.bf16.msra.mxu1 %v1636_v40 }
 0x318   :  { %1638 = vmatprep.subr.bf16.mxu1 %v1662_v0 }
 0x319   :  { %1631 = vmatpush3.bf16.msra.mxu0 %v1630_v33 }
 0x31a   :  { %1484 = vmatprep.subr.mxu0 %v1664_v4 }
 0x31b   :  { %1640 = vmatpush3.bf16.msra.mxu1 %v1639_v43 }
 0x31c   :  { %1641 = vmatprep.subr.bf16.mxu1 %v1662_v0 }
 0x31d   :  { %1485 = vmatpush3.msra.mxu0 %v849_v34 }
 0x31e   :  { %1650 = vmatprep.subr.bf16.mxu0 %v1662_v0 }
 0x31f   :  { %1643 = vmatpush3.bf16.msra.mxu1 %v1642_v57 }
 0x320   :  { %1644 = vmatprep.subr.bf16.mxu1 %v1662_v0 }
 0x3dd   :  { %v685_v44 = vpop.f32.mrb[6].mxu1  ;;  %v828_v45 = vpop.f32.mrb[8].mxu0 }
 0x3de   :  { %v1449_v46 = vpop.f32.mrb[7].mxu1  ;;  %v1467_v47 = vpop.f32.mrb[9].mxu0 }
 0x3e5   :  { %v755_v48 = vpop.f32.mrb[8].mxu1 }
 0x3e6   :  { %v756_v49 = vadd.f32 %v755_v48, %v685_v44  ;;  %v1460_v50 = vpop.f32.mrb[9].mxu1 }
 0x3e8   :  { %v832_v52 = vadd.f32 %v828_v45, %v756_v49 }
 0x3ea   :  { %v839_v53 = vadd.f32 %v1210_v51, %v832_v52 }
 0x3ec   :  { %v840_v54 = vmax.f32 %v839_v53, 0.0 }
 0x3ee   :  { %1487 = vmatmul.mubr.msk.f32.vlgmr.msra.gmra.mrb[10].mxu0 %vm857_vm3, %v840_v54 }
 0x3ef   :  { %1527 = vmatprep.mubr.msk.f32.mxu0 %vm1663_vm0, %v1664_v4 }
 0x4c1   :  { %v927_v61 = vpop.f32.mrb[10].mxu0 }
 0x4c2   :  { %v928_v62 = vadd.f32 %v1211_v58, %v927_v61  ;;  %v1488_v63 = vpop.f32.mrb[11].mxu0 }
 0x4c4   :  { %v931_v2 = vmax.f32 %v928_v62, 0.0 }
 0x4c6   :  { %1506 = vmatmul.mubr.msk.f32.vlgmr.msra.gmra.mrb[10].mxu1 %vm947_vm4, %v931_v2 }
 0x4c7   :  { %1646 = vmatpush3.bf16.msra.mxu1 %v1645_v1  ;;  %1516 = vmatprep.mubr.msk.f32.mxu1 %vm1663_vm0, %v1664_v4  ;;  %v1108_v4 = vld [vmem:[%s2049_s13 + $0x8] sm:$0xff] }
 0x4c8   :  { %1647 = vmatprep.subr.bf16.mxu1 %v1662_v0  ;;  %v1651_v8 = vpack.c.bf16 %v1108_v4, %v1107_v7 }
 0x4ca   :  { %1652 = vmatpush3.bf16.msra.mxu0 %v1651_v8 }
 0x4cb   :  { %1649 = vmatpush3.bf16.msra.mxu1 %v1648_v6  ;;  %1653 = vmatprep.subr.bf16.mxu0 %v1662_v0  ;;  %v20_v0 = vstv %s2051_s14 }
 0x4cc   :  { %21 = vst [vmem:[#allocation2] sm:$0x1] %v20_v0 }
 0x4ce   :  { %1655 = vmatpush3.bf16.msra.mxu0 %v1654_v17 }
 0x4d3   :  { %v1217_v23 = vld [vmem:[#allocation2] ss:$0 sm:$0xff] }
 0x599   :  { %v1017_v10 = vpop.f32.mrb[10].mxu1 }
 0x59a   :  { %v1018_v12 = vadd.f32 %v1213_v9, %v1017_v10  ;;  %v1507_v13 = vpop.f32.mrb[11].mxu1 }
 0x59c   :  { %v1021_v14 = vmax.f32 %v1018_v12, 0.0 }
 0x59e   :  { %1517 = vmatmul.mubr.msk.f32.vlgmr.msra.gmra.mrb[12].mxu1 %vm64_vm1, %v1021_v14 }
 0x671   :  { %v1102_v19 = vpop.f32.mrb[12].mxu1 }
 0x672   :  { %v1103_v20 = vadd.f32 %v1215_v18, %v1102_v19  ;;  %v1518_v21 = vpop.f32.mrb[13].mxu1 }
 0x674   :  { %v1106_v22 = vmax.f32 %v1103_v20, 0.0 }
 0x676   :  { %1528 = vmatmul.mubr.msk.f32.vlgmr.msra.gmra.mrb[12].mxu0 %vm64_vm1, %v1106_v22 }
 0x749   :  { %v1187_v24 = vpop.f32.mrb[12].mxu0 }
 0x74a   :  { %v1188_v25 = vadd.f32 %v1217_v23, %v1187_v24  ;;  %v1529_v26 = vpop.f32.mrb[13].mxu0 }
 0x74c   :  { %1192 = vst.msk [vmem:[%s2053_s15] sm:$0x3] %vm1191_vm5, %v1188_v25 }

</bundles_post_ra>
